<compile_context>
chip_gen: v6e
topology: v6e:2x2x1
jax: 0.10.0
libtpu: 0.0.40
codegen_flags: <defaults>
</compile_context>

<pallas_src>
import functools

import jax
import jax.numpy as jnp
from jax.experimental import pallas as pl
from jax.experimental.pallas import tpu as pltpu


# ----------------------------- kernels --------------------------------------


def _combine_kernel(state_ref, wcat_ref, b1_ref, w2_ref, bout_ref, out_ref):
    """out = state @ wp + bp + tanh(state @ w1 + b1) @ w2 + b2.

    wcat = [wp | w1]  (shape [D, D+H]),  bout = bp + b2  (shape [1, D]).
    """
    d = out_ref.shape[1]
    s = state_ref[...]

    # Single fused MXU push for both state-consuming matmuls.
    z = jnp.dot(s, wcat_ref[...], preferred_element_type=jnp.float32)
    para_pre = z[:, :d]                       # state @ wp
    h = jnp.tanh(z[:, d:] + b1_ref[...])      # tanh(state @ w1 + b1)   (EUP)

    nonpara = jnp.dot(h.astype(w2_ref.dtype), w2_ref[...],
                      preferred_element_type=jnp.float32)
    out_ref[...] = (para_pre + nonpara + bout_ref[...]).astype(out_ref.dtype)


def _para_kernel(state_ref, wp_ref, bp_ref, out_ref):
    """out = state @ wp + bp."""
    s = state_ref[...]
    out_ref[...] = (
        jnp.dot(s, wp_ref[...], preferred_element_type=jnp.float32)
        + bp_ref[...]
    ).astype(out_ref.dtype)


# --------------------- cached pallas_call builders ---------------------------


@functools.lru_cache(maxsize=None)
def _build_combine_call(B, D, H, dtype_name, tb):
    """Build the combined (para + nonpara) pallas_call once per config."""
    dtype = jnp.dtype(dtype_name)
    return pl.pallas_call(
        _combine_kernel,
        out_shape=jax.ShapeDtypeStruct((B, D), dtype),
        grid_spec=pltpu.PrefetchScalarGridSpec(
            num_scalar_prefetch=0,
            grid=(B // tb,),
            in_specs=[
                # state: tiled over batch
                pl.BlockSpec((tb, D), lambda i: (i, 0)),
                # weights / biases: constant block index -> stay resident in
                # VMEM across all batch-tile steps (no re-DMA).
                pl.BlockSpec((D, D + H), lambda i: (0, 0)),
                pl.BlockSpec((1, H), lambda i: (0, 0)),
                pl.BlockSpec((H, D), lambda i: (0, 0)),
                pl.BlockSpec((1, D), lambda i: (0, 0)),
            ],
            out_specs=pl.BlockSpec((tb, D), lambda i: (i, 0)),
        ),
        compiler_params=pltpu.CompilerParams(
            # batch tiles are independent -> megacore-shardable
            dimension_semantics=("parallel",),
        ),
    )


@functools.lru_cache(maxsize=None)
def _build_para_call(B, D, dtype_name, tb):
    """Build the para-only pallas_call once per config."""
    dtype = jnp.dtype(dtype_name)
    return pl.pallas_call(
        _para_kernel,
        out_shape=jax.ShapeDtypeStruct((B, D), dtype),
        grid_spec=pltpu.PrefetchScalarGridSpec(
            num_scalar_prefetch=0,
            grid=(B // tb,),
            in_specs=[
                pl.BlockSpec((tb, D), lambda i: (i, 0)),
                pl.BlockSpec((D, D), lambda i: (0, 0)),
                pl.BlockSpec((1, D), lambda i: (0, 0)),
            ],
            out_specs=pl.BlockSpec((tb, D), lambda i: (i, 0)),
        ),
        compiler_params=pltpu.CompilerParams(
            dimension_semantics=("parallel",),
        ),
    )


def _pick_batch_tile(B, batch_tile):
    # batch tile must divide B and be sublane-aligned; otherwise take the
    # whole batch as one block (block == full array dim is always legal).
    if B % batch_tile == 0 and batch_tile % 8 == 0:
        return batch_tile
    return B


def _combine_forward(state, w_cat, b1, w2, b_out, *, batch_tile):
    B, D = state.shape
    H = b1.shape[1]
    tb = _pick_batch_tile(B, batch_tile)
    call = _build_combine_call(B, D, H, state.dtype.name, tb)
    return call(state, w_cat, b1, w2, b_out)


def _para_forward(state, wp, bp, *, batch_tile):
    B, D = state.shape
    tb = _pick_batch_tile(B, batch_tile)
    call = _build_para_call(B, D, state.dtype.name, tb)
    return call(state, wp, bp)


# ----------------------------- wrapper --------------------------------------


class DerivationCombineModel:
    """JAX/Pallas port of the PyTorch DerivationCombineModel."""

    def __init__(self, params, mode=None, batch_tile=8):
        self.mode = mode
        if mode is None:
            self.wp = params["wp"]
            self.bp = params["bp"]
            self._fwd = jax.jit(
                functools.partial(_para_forward, batch_tile=batch_tile))
        else:
            # Host-side, one-time parameter fusion.
            self.w_cat = jnp.concatenate([params["wp"], params["w1"]], axis=1)
            self.b1 = params["b1"]
            self.w2 = params["w2"]
            self.b_out = params["bp"] + params["b2"]
            self._fwd = jax.jit(
                functools.partial(_combine_forward, batch_tile=batch_tile))

    def __call__(self, t, state):
        del t  # unused, matches the PyTorch forward signature
        if self.mode is None:
            return self._fwd(state, self.wp, self.bp)
        return self._fwd(state, self.w_cat, self.b1, self.w2, self.b_out)


def init_params(key, d, h, dtype=jnp.float32):
    """Deterministic parameter init (shapes implied by the submodules)."""
    ks = jax.random.split(key, 6)
    scale = 0.1
    return {
        # para_model: Linear(D, D), stored [in, out]
        "wp": scale * jax.random.normal(ks[0], (d, d), dtype),
        "bp": scale * jax.random.normal(ks[1], (1, d), dtype),
        # nonpara_model: Linear(D, H) -> tanh -> Linear(H, D)
        "w1": scale * jax.random.normal(ks[2], (d, h), dtype),
        "b1": scale * jax.random.normal(ks[3], (1, h), dtype),
        "w2": scale * jax.random.normal(ks[4], (h, d), dtype),
        "b2": scale * jax.random.normal(ks[5], (1, d), dtype),
    }


def _reference(params, state, mode):
    """Pure-JAX reference of the same forward pass (un-fused params)."""
    para = state @ params["wp"] + params["bp"]
    if mode is None:
        return para
    h = jnp.tanh(state @ params["w1"] + params["b1"])
    nonpara = h @ params["w2"] + params["b2"]
    return para + nonpara


# ------------------------------- main ---------------------------------------


if __name__ == "__main__":
    key = jax.random.PRNGKey(0)
    kp, ks = jax.random.split(key)

    B, D, H = 16, 32, 64          # small shapes; 2 batch tiles of 8
    params = init_params(kp, D, H)
    state = jax.random.normal(ks, (B, D), jnp.float32)
    t = jnp.float32(0.0)          # unused, as in the PyTorch forward

    # combined mode (para + nonpara) -> fused Pallas kernel
    model = DerivationCombineModel(params, mode="combine")
    out = jax.block_until_ready(model(t, state))
    # second call: hits the cached/jitted path (no rebuild of pallas_call)
    out2 = jax.block_until_ready(model(t, state))

    # mode=None (para only) -> small Pallas kernel
    model_none = DerivationCombineModel(params, mode=None)
    out_none = jax.block_until_ready(model_none(t, state))

    ref = _reference(params, state, "combine")
    ref_none = _reference(params, state, None)

    assert out.shape == (B, D) and out_none.shape == (B, D)
    assert jnp.allclose(out, ref, atol=1e-5, rtol=1e-5)
    assert jnp.allclose(out2, ref, atol=1e-5, rtol=1e-5)
    assert jnp.allclose(out_none, ref_none, atol=1e-5, rtol=1e-5)

    print("KERNEL_OK")
</pallas_src>

<mosaic_0001>
module attributes {stable_mosaic.version = 11 : i64} {
  func.func @_combine_kernel(%arg0: i32, %arg1: memref<8x32xf32, #tpu.memory_space<vmem>>, %arg2: memref<32x96xf32, #tpu.memory_space<vmem>>, %arg3: memref<1x64xf32, #tpu.memory_space<vmem>>, %arg4: memref<64x32xf32, #tpu.memory_space<vmem>>, %arg5: memref<1x32xf32, #tpu.memory_space<vmem>>, %arg6: memref<8x32xf32, #tpu.memory_space<vmem>>) attributes {dimension_semantics = [#tpu.dimension_semantics<parallel>], iteration_bounds = array<i64: 2>, scalar_prefetch = 0 : i64, scratch_operands = 0 : i64, tpu.core_type = #tpu.core_type<tc>, window_params = [{transform_indices = @transform_0, window_bounds = array<i64: 8, 32>}, {pipeline_mode = #tpu.pipeline_mode<synchronous>, transform_indices = @transform_1, window_bounds = array<i64: 32, 96>}, {pipeline_mode = #tpu.pipeline_mode<synchronous>, transform_indices = @transform_2, window_bounds = array<i64: 1, 64>}, {pipeline_mode = #tpu.pipeline_mode<synchronous>, transform_indices = @transform_3, window_bounds = array<i64: 64, 32>}, {pipeline_mode = #tpu.pipeline_mode<synchronous>, transform_indices = @transform_4, window_bounds = array<i64: 1, 32>}, {transform_indices = @transform_5, window_bounds = array<i64: 8, 32>}]} {
    %c0 = arith.constant 0 : index
    %c0_0 = arith.constant 0 : index
    %0 = vector.load %arg1[%c0, %c0_0] : memref<8x32xf32, #tpu.memory_space<vmem>>, vector<8x32xf32>
    %c0_1 = arith.constant 0 : index
    %c0_2 = arith.constant 0 : index
    %1 = vector.load %arg2[%c0_1, %c0_2] : memref<32x96xf32, #tpu.memory_space<vmem>>, vector<32x96xf32>
    %cst = arith.constant dense<0.000000e+00> : vector<8x96xf32>
    %2 = tpu.matmul %0, %1, %cst {dimension_numbers = #tpu.dot_dimension_numbers<[1], [0], [0], [1], [0, 0, 1, 1], [], []>} : vector<8x32xf32>, vector<32x96xf32>, vector<8x96xf32> -> vector<8x96xf32>
    %3 = vector.extract_strided_slice %2 {offsets = [0, 0], sizes = [8, 32], strides = [1, 1]} : vector<8x96xf32> to vector<8x32xf32>
    %4 = vector.extract_strided_slice %2 {offsets = [0, 32], sizes = [8, 64], strides = [1, 1]} : vector<8x96xf32> to vector<8x64xf32>
    %c0_3 = arith.constant 0 : index
    %c0_4 = arith.constant 0 : index
    %5 = vector.load %arg3[%c0_3, %c0_4] : memref<1x64xf32, #tpu.memory_space<vmem>>, vector<1x64xf32>
    %6 = vector.broadcast %5 : vector<1x64xf32> to vector<8x64xf32>
    %7 = arith.addf %4, %6 : vector<8x64xf32>
    %8 = math.tanh %7 : vector<8x64xf32>
    %c0_5 = arith.constant 0 : index
    %c0_6 = arith.constant 0 : index
    %9 = vector.load %arg4[%c0_5, %c0_6] : memref<64x32xf32, #tpu.memory_space<vmem>>, vector<64x32xf32>
    %cst_7 = arith.constant dense<0.000000e+00> : vector<8x32xf32>
    %10 = tpu.matmul %8, %9, %cst_7 {dimension_numbers = #tpu.dot_dimension_numbers<[1], [0], [0], [1], [0, 0, 1, 1], [], []>} : vector<8x64xf32>, vector<64x32xf32>, vector<8x32xf32> -> vector<8x32xf32>
    %11 = arith.addf %3, %10 : vector<8x32xf32>
    %c0_8 = arith.constant 0 : index
    %c0_9 = arith.constant 0 : index
    %12 = vector.load %arg5[%c0_8, %c0_9] : memref<1x32xf32, #tpu.memory_space<vmem>>, vector<1x32xf32>
    %13 = vector.broadcast %12 : vector<1x32xf32> to vector<8x32xf32>
    %14 = arith.addf %11, %13 : vector<8x32xf32>
    %c0_10 = arith.constant 0 : index
    %c0_11 = arith.constant 0 : index
    %15 = vector.load %arg6[%c0_10, %c0_11] : memref<8x32xf32, #tpu.memory_space<vmem>>, vector<8x32xf32>
    tpu.vector_store %arg6[%c0_10, %c0_11], %14 {strides = array<i32>} : memref<8x32xf32, #tpu.memory_space<vmem>>, vector<8x32xf32>,
    return
  }
  func.func @transform_0(%arg0: i32) -> (i32, i32) {
    %c0_i32 = arith.constant 0 : i32
    %c0_i32_0 = arith.constant 0 : i32
    return %arg0, %c0_i32 : i32, i32
  }
  func.func @transform_1(%arg0: i32) -> (i32, i32) {
    %c0_i32 = arith.constant 0 : i32
    %c0_i32_0 = arith.constant 0 : i32
    %c0_i32_1 = arith.constant 0 : i32
    return %c0_i32, %c0_i32_0 : i32, i32
  }
  func.func @transform_2(%arg0: i32) -> (i32, i32) {
    %c0_i32 = arith.constant 0 : i32
    %c0_i32_0 = arith.constant 0 : i32
    %c0_i32_1 = arith.constant 0 : i32
    return %c0_i32, %c0_i32_0 : i32, i32
  }
  func.func @transform_3(%arg0: i32) -> (i32, i32) {
    %c0_i32 = arith.constant 0 : i32
    %c0_i32_0 = arith.constant 0 : i32
    %c0_i32_1 = arith.constant 0 : i32
    return %c0_i32, %c0_i32_0 : i32, i32
  }
  func.func @transform_4(%arg0: i32) -> (i32, i32) {
    %c0_i32 = arith.constant 0 : i32
    %c0_i32_0 = arith.constant 0 : i32
    %c0_i32_1 = arith.constant 0 : i32
    return %c0_i32, %c0_i32_0 : i32, i32
  }
  func.func @transform_5(%arg0: i32) -> (i32, i32) {
    %c0_i32 = arith.constant 0 : i32
    %c0_i32_0 = arith.constant 0 : i32
    return %arg0, %c0_i32 : i32, i32
  }
}

</mosaic_0001>

<bundles_post_ra>
// kernel: _combine_forward.1
= control target key start
LH: loop header
LB: loop body
LE: loop exit
PB: predicated region body
PF: predicated region fallthrough
CT: control target
= control target key end

     0   :  { %10 = vsyncpa [#allocation3], 0  ;;  %s808_s0 = inlined_call_operand.vmem [shape: f32[16,32], index: 0, kind: input, shape index: {}]   ;;  %s809_s1 = inlined_call_operand.vmem [shape: f32[32,96], index: 1, kind: input, shape index: {}]   ;;  %s810_s2 = inlined_call_operand.vmem [shape: f32[1,64], index: 2, kind: input, shape index: {}]   ;;  %s811_s3 = inlined_call_operand.vmem [shape: f32[64,32], index: 3, kind: input, shape index: {}]   ;;  %s812_s4 = inlined_call_operand.vmem [shape: f32[1,32], index: 4, kind: input, shape index: {}]   ;;  %s813_s5 = inlined_call_operand.hbm [shape: f32[16,32], index: 5, kind: output, shape index: {}]  }
   0x1   :  { %12 = vsyncpa [#allocation3 + $0x1], 0  ;;  %s677_s18 = smov 0   ;;  %s679_s19 = smov 0  }
   0x2   :  { %s681_s20 = smov 0   ;;  %s683_s21 = smov 0  }
   0x3 LB: > { %s698_s22 = sadd.s32 4294967295, %s640_s21   ;;  %s477_s23 = sadd.s32 4294967294, %s640_s21   ;;  %s640_s21 = sphi %s683_s21, %s819_s21   ;;  %s636_s20 = sphi %s681_s20, %s818_s20   ;;  %s632_s19 = sphi %s679_s19, %s817_s19   ;;  %s628_s18 = sphi %s677_s18, %s816_s18  }
   0x4   : > { %s702_s24 = sadd.s32 1, %s640_s21   ;;  %s135_s25 = sadd.s32 1, %s636_s20 }
   0x5   : > { %s132_s26 = ssub.s32 %s640_s21, %s702_s24  ;;  %p145_p0 = scmp.ne.s32.totalorder %s636_s20, %s632_s19 }
   0x6   : > { %p133_p1 = scmp.eq.s32.totalorder %s132_s26, 0  ;;  %p146_p2 = scmp.eq.s32.totalorder %s698_s22, 1 }
   0x7   : > { %p151_p3 = scmp.ne.s32.totalorder %s632_s19, %s628_s18  ;;  %p152_p4 = scmp.eq.s32.totalorder %s477_s23, 1 }
   0x8   : > { %s713_s27 = scalar_select %p133_p1, %s636_s20, %s135_s25  }
   0x9   : > { %p715_p5 = por %p146_p2, %p145_p0  ;;  %p719_p6 = por %p152_p4, %p151_p3 }
   0xa   : > { %p480_p7 = scmp.ge.s32.totalorder %s640_s21, 1  ;;  %p189_p8 = scmp.lt.s32.totalorder %s640_s21, 3 }
   0xc   : > { %p190_p9 = pnand %p480_p7, %p189_p8 }
   0xd   : > { %p216_p10 = scmp.lt.s32.totalorder (!%p190_p9), %s698_s22, 1  ;;  %s644_s12 = smov (!%p190_p9), 32  }
   0xe   : > { %193 = sbr.rel (%p190_p9) target bundleno = 562 (0x232), region = 40  ;;  %s645_s30 = smov (!%p190_p9), 96  }
   0xf   : > { %s213_s6 = sand.u32 (!%p190_p9), 1, %s632_s19   ;;  %s488_s10 = sshll.u32 (!%p190_p9), %s698_s22, 7 }
  0x10   : > { %s481_s7 = sshll.u32 (!%p190_p9), %s213_s6, 3  ;;  %s405_s16 = scalar_lea.sflag (!%p190_p9), [#allocation3], %s213_s6 }
  0x11   : > { %s646_s23 = smov (!%p190_p9), [#allocation2]  }
  0x13   : > { %v224_v0 = vld [vmem:[%s809_s1 + $0x18] sm:$0xff]  ;;  %v642_v1 = vmov 0.0   ;;  %v223_v2 = vld [vmem:[%s809_s1 + $0x10] sm:$0xff]  ;;  %vm643_vm0 = vmmov 0   ;;  %v484_v3 = vld [vmem:[%s810_s2] ss:$0 sm:$0xff] }
  0x14   : > { %505 = vmatprep.subr.mxu0 %v642_v1  ;;  %513 = vmatprep.mubr.msk.f32.mxu0 %vm643_vm0, %v642_v1  ;;  %s217_s11 = scalar_select %p216_p10, %s698_s22, 1  ;;  %v222_v4 = vld [vmem:[%s809_s1 + $0x8] sm:$0xff]  ;;  %v221_v5 = vld [vmem:[%s809_s1] sm:$0xff]  ;;  %vm225_vm1 = vcmask 261120   ;;  %v317_v7 = vld [vmem:[%s811_s3 + $0x38] sm:$0xff]  ;;  %vm321_vm2 = vcmask 523264  }
  0x15   : > { %506 = vmatpush3.msra.mxu0 %v224_v0  ;;  %305 = vrot.lane.b32.xlu0 %v484_v3, %s644_s12  ;;  %v316_v8 = vld [vmem:[%s811_s3 + $0x30] sm:$0xff]  ;;  %v315_v9 = vld [vmem:[%s811_s3 + $0x28] sm:$0xff]  ;;  %v314_v10 = vld [vmem:[%s811_s3 + $0x20] sm:$0xff]  ;;  %s584_s22 = sshll.u32 %s646_s23, 4  ;;  %s585_s22 = int_to_ptr.vmem [resolvable:$false] %s584_s22 }
  0x16   : > { %507 = vmatprep.subr.mxu0 %v642_v1  ;;  %516 = vmatprep.subr.mxu1 %v642_v1  ;;  %s482_s15 = sshll.u32 %s217_s11, 3  ;;  %v313_v11 = vld [vmem:[%s811_s3 + $0x18] sm:$0xff]  ;;  %v312_v12 = vld [vmem:[%s811_s3 + $0x10] sm:$0xff]  ;;  %v311_v13 = vld [vmem:[%s811_s3 + $0x8] sm:$0xff]  ;;  %s215_s11 = scalar_lea.vmem [#allocation2], %s481_s7 }
  0x17   : > { %508 = vmatpush3.msra.mxu0 %v223_v2  ;;  %532 = vmatprep.mubr.msk.f32.mxu1 %vm643_vm0, %v642_v1  ;;  %s219_s26 = scalar_lea.vmem %s808_s0, %s482_s15  ;;  %v310_v14 = vld [vmem:[%s811_s3] sm:$0xff]  ;;  %s418_s12 = sshll.u32 %s215_s11, 4  ;;  %s419_s12 = int_to_ptr.vmem [resolvable:$true] %s418_s12 }
  0x18   : > { %509 = vmatprep.subr.mxu0 %v642_v1  ;;  %v220_v6 = vld [vmem:[%s219_s26] sm:$0xff]  ;;  %517 = vmatpush3.msra.mxu1 %v317_v7  ;;  %s416_s15 = scalar_lea.hbm %s813_s5, %s488_s10  ;;  %s580_s17 = scalar_lea.vmem %s419_s12, 128 }
  0x19   : > { %510 = vmatpush3.msra.mxu0 %v222_v4  ;;  %518 = vmatprep.subr.mxu1 %v642_v1  ;;  %v486_v22 = vld [vmem:[%s812_s4] ss:$0 sm:$0xff]  ;;  %p581_p11 = scmp.ne.s32.totalorder %s419_s12, %s580_s17  ;;  %s586_s25 = scalar_lea.vmem %s585_s22, 256 }
  0x1a   : > { %511 = vmatprep.subr.mxu0 %v642_v1  ;;  %519 = vmatpush3.msra.mxu1 %v316_v8  ;;  %p587_p0 = scmp.lt.s32.totalorder %s419_s12, %s585_s22  ;;  %p588_p1 = scmp.lt.s32.totalorder %s586_s25, %s580_s17 }
  0x1b   : > { %512 = vmatpush3.msra.mxu0 %v221_v5  ;;  %520 = vmatprep.subr.mxu1 %v642_v1  ;;  %p582_p12 = pnand %p581_p11, %p715_p5 }
  0x1c   : > { %514 = vmatmul.mubr.msk.f32.vlgmr.msra.gmra.mxu0 %vm225_vm1, %v220_v6  ;;  %521 = vmatpush3.msra.mxu1 %v315_v9  ;;  %p589_p2 = por %p588_p1, %p587_p0 }
  0x1d   : > { %522 = vmatprep.subr.mxu1 %v642_v1  ;;  %p583_p13 = pneg %p582_p12 }
  0x1e   : > { %523 = vmatpush3.msra.mxu1 %v314_v10 }
  0x1f   : > { %524 = vmatprep.subr.mxu1 %v642_v1  ;;  %p590_p3 = pnand %p589_p2, %p583_p13 }
  0x20   : > { %525 = vmatpush3.msra.mxu1 %v313_v11 }
  0x21   : > { %526 = vmatprep.subr.mxu1 %v642_v1 }
  0x22   : > { %527 = vmatpush3.msra.mxu1 %v312_v12 }
  0x23   : > { %528 = vmatprep.subr.mxu1 %v642_v1 }
  0x24   : > { %529 = vmatpush3.msra.mxu1 %v311_v13 }
  0x25   : > { %530 = vmatprep.subr.mxu1 %v642_v1 }
  0x26   : > { %531 = vmatpush3.msra.mxu1 %v310_v14 }
  0x87   : > { %v306_v15 = vpop.permute.xlu0 %305 }
  0xdc   : > { %v295_v16 = vpop.f32.mrf.mxu0 }
  0xdd   : > { %v308_v17 = vadd.f32 %v306_v15, %v295_v16 }
  0xde   : > { %v515_v18 = vpop.f32.mrf.mxu0 }
  0xdf   : > { %578 = vtanh.f32 %v308_v17 }
  0xec   : > { %v579_v19 = vpop.eup %578 }
  0xed   : > { %319 = vrot.lane.b32.xlu0 %v579_v19, %s645_s30 }
 0x15f   : > { %v320_v20 = vpop.permute.xlu0 %319 }
 0x160   : > { %533 = vmatmul.mubr.msk.f32.vlgmr.msra.gmra.mxu1 %vm321_vm2, %v320_v20 }
 0x220   : > { %v390_v21 = vpop.f32.mrf.mxu1 }
 0x221   : > { %v394_v23 = vadd.f32 %v390_v21, %v295_v16 }
 0x222   : > { %v534_v24 = vpop.f32.mrf.mxu1 }
 0x223   : > { %v402_v25 = vadd.f32 %v486_v22, %v394_v23 }
 0x225   : > { %403 = vst.msk [vmem:[%s215_s11] sm:$0xff] %vm225_vm1, %v402_v25 }
 0x226   : > { %593 = shalt.err (!%p590_p3)
}
 0x227   : > { %s594_s26 = scalar_lea.hbm %s416_s15, 128  ;;  %s598_s7 = scalar_lea.hbm %s813_s5, 256 }
 0x228   : > { %p595_p4 = scmp.ne.s32.totalorder %s416_s15, %s594_s26  ;;  %p599_p9 = scmp.lt.s32.totalorder %s416_s15, %s813_s5 }
 0x229   : > { %p600_p10 = scmp.lt.s32.totalorder %s598_s7, %s594_s26 }
 0x22a   : > { %p596_p7 = pnand %p595_p4, %p715_p5 }
 0x22b   : > { %p601_p11 = por %p600_p10, %p599_p9 }
 0x22c   : > { %p597_p8 = pneg %p596_p7 }
 0x22e   : > { %p602_p12 = pnand %p601_p11, %p597_p8 }
 0x230   : > { %605 = shalt.err (!%p602_p12)
}
 0x231   : > { %535 = dma.vmem_to_hbm [thread:$0]  (%p715_p5), %s419_s12, 128, %s416_s15, %s405_s16  }
 0x232 PF: > { %p541_p13 = scmp.ge.s32.totalorder %s640_s21, 2  ;;  %s430_s10 = sand.u32 1, %s628_s18  }
 0x233   : > { %s431_s11 = scalar_lea.sflag [#allocation3], %s430_s10 }
 0x234   : > { %p538_p0 = pnand %p541_p13, %p719_p6 }
 0x236   : > { %p539_p1 = pneg %p538_p0 }
 0x238   : > { %623 = dma.done.wait (%p539_p1), %s431_s11, 128  }
 0x239   : > { %625 = vsyncadd (%p539_p1), %s431_s11, 4294967168  ;;  %p15_p2 = scmp.ge.s32.totalorder %s702_s24, 4   ;;  %s816_s18 = smov %s632_s19 }
 0x23a   : > { %s817_s19 = smov %s636_s20  ;;  %s818_s20 = smov %s713_s27 }
 0x23b   : > { %s819_s21 = smov %s702_s24  ;;  %17 = sbr.rel (!%p15_p2) target bundleno = 3 (0x3), region = 75 }
 0x240   :  { %436 = vsyncpa [#allocation3], 1 }
 0x241   :  { %438 = vsyncpa [#allocation3 + $0x1], 1 }

</bundles_post_ra>
